<compile_context>
chip_gen: v7x
topology: tpu7x:2x2x1
jax: 0.10.0
libtpu: 0.0.40
codegen_flags: <defaults>
</compile_context>

<pallas_src>
import math

import jax
import jax.numpy as jnp
from jax.experimental import pallas as pl
from jax.experimental.pallas import tpu as pltpu


def _round_up(x: int, m: int) -> int:
    return ((x + m - 1) // m) * m


def _vmem_capacity_bytes() -> int:
    """Physical VMEM per core; conservative (v7x-sized) fallback if the query fails."""
    try:
        return int(pltpu.get_tpu_info().vmem_capacity_bytes)
    except Exception:
        return 64 * 1024 * 1024


def _make_groupnorm_kernel(group_size: int, eps: float):
    inv_gs = 1.0 / float(group_size)

    def kernel(x_ref, w_ref, b_ref, ind_ref, o_ref):
        # x_ref: (TM, Hf) in its native dtype (bf16 feeds the MXU directly).
        # ind_ref: (Hf, Gf) group indicator (0/1), same float family as x.
        x = x_ref[...]
        ind = ind_ref[...]
        ind_f32 = ind.astype(jnp.float32)          # no-op for f32 inputs; tiny for bf16

        # Pass 1: per-(row, group) sums on the otherwise-idle MXU -> means.
        s = jnp.dot(x, ind, preferred_element_type=jnp.float32)            # (TM, Gf)
        mean = s * inv_gs
        # Broadcast group means back across channels by contracting the group axis
        # of the SAME indicator (no transposed copy of it is needed).
        mean_b = jax.lax.dot_general(
            mean, ind_f32, dimension_numbers=(((1,), (1,)), ((), ())),
            preferred_element_type=jnp.float32)                             # (TM, Hf)

        # Pass 2: centered variance (x is resident in VMEM, so this is cheap and
        # avoids E[x^2] - mean^2 catastrophic cancellation).
        d = x - mean_b                                                      # f32 (TM, Hf)
        s2 = jnp.dot(d * d, ind_f32, preferred_element_type=jnp.float32)    # (TM, Gf)
        inv = jax.lax.rsqrt(s2 * inv_gs + eps)
        inv_b = jax.lax.dot_general(
            inv, ind_f32, dimension_numbers=(((1,), (1,)), ((), ())),
            preferred_element_type=jnp.float32)                             # (TM, Hf)

        w = w_ref[...].astype(jnp.float32)                                  # (1, Hf)
        b = b_ref[...].astype(jnp.float32)                                  # (1, Hf)
        o_ref[...] = (d * inv_b * w + b).astype(o_ref.dtype)

    return kernel


def group_norm(x, weight, bias, num_groups: int, eps: float = 1e-12, tile_rows=None):
    """GroupNorm over the last axis of x (any leading shape); matches the torch module."""
    orig_shape = x.shape
    hidden = orig_shape[-1]
    if hidden % num_groups != 0:
        raise ValueError("hidden_size must be divisible by num_groups")
    group_size = hidden // num_groups

    x2d = x.reshape(-1, hidden)
    n_rows = x2d.shape[0]

    # ---- Lane-dense folding: fold `fold` rows into the lane axis so the kernel's
    #      last dim is a multiple of 128 even for small/odd H. ----
    fold = 128 // math.gcd(hidden, 128)           # smallest r with (r*H) % 128 == 0
    hf = fold * hidden                            # folded hidden (lane) size
    gf = fold * num_groups                        # folded number of groups

    n_pad = _round_up(n_rows, fold)
    if n_pad != n_rows:
        x2d = jnp.pad(x2d, ((0, n_pad - n_rows), (0, 0)))
    nf = n_pad // fold
    xf = x2d.reshape(nf, hf)

    # Indicator / affine params in the folded layout.  group(folded channel c) = c // gs
    # because each original row contributes a contiguous block of G groups.
    if x.dtype in (jnp.dtype(jnp.bfloat16), jnp.dtype(jnp.float16)):
        ind_dtype = x.dtype                        # 0/1 exact; lets the MXU eat x natively
    else:
        ind_dtype = jnp.float32
    ch = jnp.arange(hf, dtype=jnp.int32)
    gr = jnp.arange(gf, dtype=jnp.int32)
    ind = (ch[:, None] // group_size == gr[None, :]).astype(ind_dtype)      # (Hf, Gf)
    w2d = jnp.tile(weight.reshape(1, hidden), (1, fold))                     # (1, Hf)
    b2d = jnp.tile(bias.reshape(1, hidden), (1, fold))                       # (1, Hf)

    # ---- Tile sizing (VMEM-aware, pipeline-aware). ----
    in_bytes = jnp.dtype(x.dtype).itemsize
    vmem_cap = _vmem_capacity_bytes()
    tile_budget = int(vmem_cap * 0.45)            # 2x in + 2x out + ~5 f32 temps must fit
    const_bytes = (hf * gf + 2 * hf) * 4          # single-buffered ind + weight + bias

    if tile_rows is None:
        bytes_per_row = hf * (4 * in_bytes + 5 * 4)
        budget_rows = max(tile_budget - const_bytes, 0) // max(bytes_per_row, 1)
        budget_rows = max(8, min(4096, (budget_rows // 8) * 8))
        # Aim for >= ~8 grid steps (prefetch/writeback overlap, v7x 2-core balance),
        # but keep >= ~3 MiB of input per step so per-step overhead stays amortized.
        steps_rows = _round_up(pl.cdiv(nf, 8), 8)
        min_bw_rows = _round_up(max((3 << 20) // max(hf * in_bytes, 1), 1), 8)
        tile_rows = min(budget_rows, max(steps_rows, min_bw_rows))
    tile_rows = _round_up(max(int(tile_rows), 8), 8)
    tile_rows = min(tile_rows, _round_up(nf, 8))

    grid = (pl.cdiv(nf, tile_rows),)
    kernel = _make_groupnorm_kernel(group_size, eps)

    cost = pl.CostEstimate(
        flops=int(8 * nf * hf * gf + 8 * nf * hf),
        transcendentals=int(nf * gf),
        bytes_accessed=int(2 * nf * hf * in_bytes + const_bytes),
    )

    def _launch(const_pipeline_mode):
        const_kw = {} if const_pipeline_mode is None else {"pipeline_mode": const_pipeline_mode}
        return pl.pallas_call(
            kernel,
            out_shape=jax.ShapeDtypeStruct((nf, hf), x.dtype),
            grid_spec=pltpu.PrefetchScalarGridSpec(
                num_scalar_prefetch=0,
                grid=grid,
                in_specs=[
                    pl.BlockSpec((tile_rows, hf), lambda i: (i, 0)),
                    pl.BlockSpec((1, hf), lambda i: (0, 0), **const_kw),
                    pl.BlockSpec((1, hf), lambda i: (0, 0), **const_kw),
                    pl.BlockSpec((hf, gf), lambda i: (0, 0), **const_kw),
                ],
                out_specs=pl.BlockSpec((tile_rows, hf), lambda i: (i, 0)),
            ),
            compiler_params=pltpu.CompilerParams(
                dimension_semantics=("parallel",),
                vmem_limit_bytes=int(vmem_cap * 0.7),
            ),
            cost_estimate=cost,
        )(xf, w2d, b2d, ind)

    try:
        # Constant index_map operands -> single buffer (saves VMEM for bigger row tiles).
        out = _launch(pl.Buffered(1))
    except Exception:
        # Fallback for jax versions without per-operand pipeline_mode / Buffered(1).
        out = _launch(None)

    out = out.reshape(n_pad, hidden)[:n_rows]
    return out.reshape(orig_shape)


def _reference_group_norm(x, weight, bias, num_groups, eps):
    orig_shape = x.shape
    h = orig_shape[-1]
    xg = x.reshape(*orig_shape[:-1], num_groups, h // num_groups).astype(jnp.float32)
    mean = jnp.mean(xg, axis=-1, keepdims=True)
    var = jnp.mean((xg - mean) ** 2, axis=-1, keepdims=True)
    xn = ((xg - mean) / jnp.sqrt(var + eps)).reshape(orig_shape)
    return (xn * weight + bias).astype(x.dtype)


if __name__ == "__main__":
    key = jax.random.PRNGKey(0)
    kx, kw, kb, kx2, kx3, kw3, kb3 = jax.random.split(key, 7)

    num_groups = 4
    eps = 1e-12  # module default (note: differs from torch.nn.GroupNorm's 1e-5 on purpose)

    # Case 1: module-default init (weight=ones, bias=zeros), H=32 -> lane-fold r=4.
    batch, seq, hidden = 2, 8, 32
    x = jax.random.normal(kx, (batch, seq, hidden), dtype=jnp.float32)
    weight = jnp.ones((hidden,), dtype=jnp.float32)
    bias = jnp.zeros((hidden,), dtype=jnp.float32)
    out = jax.block_until_ready(group_norm(x, weight, bias, num_groups, eps))
    ref = _reference_group_norm(x, weight, bias, num_groups, eps)
    assert out.shape == x.shape
    assert jnp.allclose(out, ref, atol=1e-5, rtol=1e-5), "mismatch vs reference (case 1)"

    # Case 2: non-trivial affine and a row count that does NOT divide the fold factor
    # (exercises the padded fold + masked partial last block).
    batch2, seq2 = 2, 5
    x2 = jax.random.normal(kx2, (batch2, seq2, hidden), dtype=jnp.float32)
    weight2 = 1.0 + 0.1 * jax.random.normal(kw, (hidden,), dtype=jnp.float32)
    bias2 = 0.1 * jax.random.normal(kb, (hidden,), dtype=jnp.float32)
    out2 = jax.block_until_ready(group_norm(x2, weight2, bias2, num_groups, eps))
    ref2 = _reference_group_norm(x2, weight2, bias2, num_groups, eps)
    assert jnp.allclose(out2, ref2, atol=1e-5, rtol=1e-5), "mismatch vs reference (case 2)"

    # Case 3: bf16 activations, lane-aligned H=128 (no fold), native-dtype MXU stats path.
    batch3, seq3, hidden3, groups3 = 3, 7, 128, 8
    x3 = jax.random.normal(kx3, (batch3, seq3, hidden3), dtype=jnp.float32).astype(jnp.bfloat16)
    weight3 = 1.0 + 0.1 * jax.random.normal(kw3, (hidden3,), dtype=jnp.float32)
    bias3 = 0.1 * jax.random.normal(kb3, (hidden3,), dtype=jnp.float32)
    out3 = jax.block_until_ready(group_norm(x3, weight3, bias3, groups3, eps))
    ref3 = _reference_group_norm(x3, weight3, bias3, groups3, eps)
    assert out3.dtype == x3.dtype
    assert jnp.allclose(out3.astype(jnp.float32), ref3.astype(jnp.float32),
                        atol=6e-2, rtol=6e-2), "mismatch vs reference (case 3)"

    print("KERNEL_OK")
</pallas_src>

<mosaic_0001>
module attributes {stable_mosaic.version = 11 : i64} {
  func.func @kernel(%arg0: i32, %arg1: memref<8x128xf32, #tpu.memory_space<vmem>>, %arg2: memref<1x128xf32, #tpu.memory_space<vmem>>, %arg3: memref<1x128xf32, #tpu.memory_space<vmem>>, %arg4: memref<128x16xf32, #tpu.memory_space<vmem>>, %arg5: memref<8x128xf32, #tpu.memory_space<vmem>>) attributes {dimension_semantics = [#tpu.dimension_semantics<parallel>], iteration_bounds = array<i64: 1>, scalar_prefetch = 0 : i64, scratch_operands = 0 : i64, tpu.core_type = #tpu.core_type<tc>, window_params = [{transform_indices = @transform_0, window_bounds = array<i64: 8, 128>}, {pipeline_mode = #tpu.pipeline_mode<synchronous>, transform_indices = @transform_1, window_bounds = array<i64: 1, 128>}, {pipeline_mode = #tpu.pipeline_mode<synchronous>, transform_indices = @transform_2, window_bounds = array<i64: 1, 128>}, {pipeline_mode = #tpu.pipeline_mode<synchronous>, transform_indices = @transform_3, window_bounds = array<i64: 128, 16>}, {transform_indices = @transform_4, window_bounds = array<i64: 8, 128>}]} {
    %c0 = arith.constant 0 : index
    %c0_0 = arith.constant 0 : index
    %0 = vector.load %arg1[%c0, %c0_0] : memref<8x128xf32, #tpu.memory_space<vmem>>, vector<8x128xf32>
    %c0_1 = arith.constant 0 : index
    %c0_2 = arith.constant 0 : index
    %1 = vector.load %arg4[%c0_1, %c0_2] : memref<128x16xf32, #tpu.memory_space<vmem>>, vector<128x16xf32>
    %cst = arith.constant dense<0.000000e+00> : vector<8x16xf32>
    %2 = tpu.matmul %0, %1, %cst {dimension_numbers = #tpu.dot_dimension_numbers<[1], [0], [0], [1], [0, 0, 1, 1], [], []>} : vector<8x128xf32>, vector<128x16xf32>, vector<8x16xf32> -> vector<8x16xf32>
    %cst_3 = arith.constant 1.250000e-01 : f32
    %3 = vector.broadcast %cst_3 : f32 to vector<8x16xf32>
    %4 = arith.mulf %2, %3 : vector<8x16xf32>
    %cst_4 = arith.constant dense<0.000000e+00> : vector<8x128xf32>
    %5 = tpu.matmul %4, %1, %cst_4 {dimension_numbers = #tpu.dot_dimension_numbers<[1], [1], [0], [0], [0, 0, 1, 0], [], []>} : vector<8x16xf32>, vector<128x16xf32>, vector<8x128xf32> -> vector<8x128xf32>
    %6 = arith.subf %0, %5 : vector<8x128xf32>
    %7 = arith.mulf %6, %6 : vector<8x128xf32>
    %cst_5 = arith.constant dense<0.000000e+00> : vector<8x16xf32>
    %8 = tpu.matmul %7, %1, %cst_5 {dimension_numbers = #tpu.dot_dimension_numbers<[1], [0], [0], [1], [0, 0, 1, 1], [], []>} : vector<8x128xf32>, vector<128x16xf32>, vector<8x16xf32> -> vector<8x16xf32>
    %cst_6 = arith.constant 1.250000e-01 : f32
    %9 = vector.broadcast %cst_6 : f32 to vector<8x16xf32>
    %10 = arith.mulf %8, %9 : vector<8x16xf32>
    %cst_7 = arith.constant 9.99999996E-13 : f32
    %11 = vector.broadcast %cst_7 : f32 to vector<8x16xf32>
    %12 = arith.addf %10, %11 : vector<8x16xf32>
    %13 = math.rsqrt %12 : vector<8x16xf32>
    %cst_8 = arith.constant dense<0.000000e+00> : vector<8x128xf32>
    %14 = tpu.matmul %13, %1, %cst_8 {dimension_numbers = #tpu.dot_dimension_numbers<[1], [1], [0], [0], [0, 0, 1, 0], [], []>} : vector<8x16xf32>, vector<128x16xf32>, vector<8x128xf32> -> vector<8x128xf32>
    %c0_9 = arith.constant 0 : index
    %c0_10 = arith.constant 0 : index
    %15 = vector.load %arg2[%c0_9, %c0_10] : memref<1x128xf32, #tpu.memory_space<vmem>>, vector<1x128xf32>
    %c0_11 = arith.constant 0 : index
    %c0_12 = arith.constant 0 : index
    %16 = vector.load %arg3[%c0_11, %c0_12] : memref<1x128xf32, #tpu.memory_space<vmem>>, vector<1x128xf32>
    %17 = arith.mulf %6, %14 : vector<8x128xf32>
    %18 = vector.broadcast %15 : vector<1x128xf32> to vector<8x128xf32>
    %19 = arith.mulf %17, %18 : vector<8x128xf32>
    %20 = vector.broadcast %16 : vector<1x128xf32> to vector<8x128xf32>
    %21 = arith.addf %19, %20 : vector<8x128xf32>
    %c0_13 = arith.constant 0 : index
    %c0_14 = arith.constant 0 : index
    %22 = vector.load %arg5[%c0_13, %c0_14] : memref<8x128xf32, #tpu.memory_space<vmem>>, vector<8x128xf32>
    tpu.vector_store %arg5[%c0_13, %c0_14], %21 {strides = array<i32>} : memref<8x128xf32, #tpu.memory_space<vmem>>, vector<8x128xf32>,
    return
  }
  func.func @transform_0(%arg0: i32) -> (i32, i32) {
    %c0_i32 = arith.constant 0 : i32
    %c0_i32_0 = arith.constant 0 : i32
    return %arg0, %c0_i32 : i32, i32
  }
  func.func @transform_1(%arg0: i32) -> (i32, i32) {
    %c0_i32 = arith.constant 0 : i32
    %c0_i32_0 = arith.constant 0 : i32
    %c0_i32_1 = arith.constant 0 : i32
    return %c0_i32, %c0_i32_0 : i32, i32
  }
  func.func @transform_2(%arg0: i32) -> (i32, i32) {
    %c0_i32 = arith.constant 0 : i32
    %c0_i32_0 = arith.constant 0 : i32
    %c0_i32_1 = arith.constant 0 : i32
    return %c0_i32, %c0_i32_0 : i32, i32
  }
  func.func @transform_3(%arg0: i32) -> (i32, i32) {
    %c0_i32 = arith.constant 0 : i32
    %c0_i32_0 = arith.constant 0 : i32
    %c0_i32_1 = arith.constant 0 : i32
    return %c0_i32, %c0_i32_0 : i32, i32
  }
  func.func @transform_4(%arg0: i32) -> (i32, i32) {
    %c0_i32 = arith.constant 0 : i32
    %c0_i32_0 = arith.constant 0 : i32
    return %arg0, %c0_i32 : i32, i32
  }
}

module attributes {stable_mosaic.version = 11 : i64} {
  func.func @kernel(%arg0: i32, %arg1: memref<8x128xf32, #tpu.memory_space<vmem>>, %arg2: memref<1x128xf32, #tpu.memory_space<vmem>>, %arg3: memref<1x128xf32, #tpu.memory_space<vmem>>, %arg4: memref<128x16xf32, #tpu.memory_space<vmem>>, %arg5: memref<8x128xf32, #tpu.memory_space<vmem>>) attributes {dimension_semantics = [#tpu.dimension_semantics<parallel>], iteration_bounds = array<i64: 1>, scalar_prefetch = 0 : i64, scratch_operands = 0 : i64, tpu.core_type = #tpu.core_type<tc>, window_params = [{transform_indices = @transform_0, window_bounds = array<i64: 8, 128>}, {pipeline_mode = #tpu.pipeline_mode<synchronous>, transform_indices = @transform_1, window_bounds = array<i64: 1, 128>}, {pipeline_mode = #tpu.pipeline_mode<synchronous>, transform_indices = @transform_2, window_bounds = array<i64: 1, 128>}, {pipeline_mode = #tpu.pipeline_mode<synchronous>, transform_indices = @transform_3, window_bounds = array<i64: 128, 16>}, {transform_indices = @transform_4, window_bounds = array<i64: 8, 128>}]} {
    %c0 = arith.constant 0 : index
    %c0_0 = arith.constant 0 : index
    %0 = vector.load %arg1[%c0, %c0_0] : memref<8x128xf32, #tpu.memory_space<vmem>>, vector<8x128xf32>
    %c0_1 = arith.constant 0 : index
    %c0_2 = arith.constant 0 : index
    %1 = vector.load %arg4[%c0_1, %c0_2] : memref<128x16xf32, #tpu.memory_space<vmem>>, vector<128x16xf32>
    %cst = arith.constant dense<0.000000e+00> : vector<8x16xf32>
    %2 = tpu.matmul %0, %1, %cst {dimension_numbers = #tpu.dot_dimension_numbers<[1], [0], [0], [1], [0, 0, 1, 1], [], []>} : vector<8x128xf32>, vector<128x16xf32>, vector<8x16xf32> -> vector<8x16xf32>
    %cst_3 = arith.constant 1.250000e-01 : f32
    %3 = vector.broadcast %cst_3 : f32 to vector<8x16xf32>
    %4 = arith.mulf %2, %3 : vector<8x16xf32>
    %cst_4 = arith.constant dense<0.000000e+00> : vector<8x128xf32>
    %5 = tpu.matmul %4, %1, %cst_4 {dimension_numbers = #tpu.dot_dimension_numbers<[1], [1], [0], [0], [0, 0, 1, 0], [], []>} : vector<8x16xf32>, vector<128x16xf32>, vector<8x128xf32> -> vector<8x128xf32>
    %6 = arith.subf %0, %5 : vector<8x128xf32>
    %7 = arith.mulf %6, %6 : vector<8x128xf32>
    %cst_5 = arith.constant dense<0.000000e+00> : vector<8x16xf32>
    %8 = tpu.matmul %7, %1, %cst_5 {dimension_numbers = #tpu.dot_dimension_numbers<[1], [0], [0], [1], [0, 0, 1, 1], [], []>} : vector<8x128xf32>, vector<128x16xf32>, vector<8x16xf32> -> vector<8x16xf32>
    %cst_6 = arith.constant 1.250000e-01 : f32
    %9 = vector.broadcast %cst_6 : f32 to vector<8x16xf32>
    %10 = arith.mulf %8, %9 : vector<8x16xf32>
    %cst_7 = arith.constant 9.99999996E-13 : f32
    %11 = vector.broadcast %cst_7 : f32 to vector<8x16xf32>
    %12 = arith.addf %10, %11 : vector<8x16xf32>
    %13 = math.rsqrt %12 : vector<8x16xf32>
    %cst_8 = arith.constant dense<0.000000e+00> : vector<8x128xf32>
    %14 = tpu.matmul %13, %1, %cst_8 {dimension_numbers = #tpu.dot_dimension_numbers<[1], [1], [0], [0], [0, 0, 1, 0], [], []>} : vector<8x16xf32>, vector<128x16xf32>, vector<8x128xf32> -> vector<8x128xf32>
    %c0_9 = arith.constant 0 : index
    %c0_10 = arith.constant 0 : index
    %15 = vector.load %arg2[%c0_9, %c0_10] : memref<1x128xf32, #tpu.memory_space<vmem>>, vector<1x128xf32>
    %c0_11 = arith.constant 0 : index
    %c0_12 = arith.constant 0 : index
    %16 = vector.load %arg3[%c0_11, %c0_12] : memref<1x128xf32, #tpu.memory_space<vmem>>, vector<1x128xf32>
    %17 = arith.mulf %6, %14 : vector<8x128xf32>
    %18 = vector.broadcast %15 : vector<1x128xf32> to vector<8x128xf32>
    %19 = arith.mulf %17, %18 : vector<8x128xf32>
    %20 = vector.broadcast %16 : vector<1x128xf32> to vector<8x128xf32>
    %21 = arith.addf %19, %20 : vector<8x128xf32>
    %c0_13 = arith.constant 0 : index
    %c0_14 = arith.constant 0 : index
    %22 = vector.load %arg5[%c0_13, %c0_14] : memref<8x128xf32, #tpu.memory_space<vmem>>, vector<8x128xf32>
    tpu.vector_store %arg5[%c0_13, %c0_14], %21 {strides = array<i32>} : memref<8x128xf32, #tpu.memory_space<vmem>>, vector<8x128xf32>,
    return
  }
  func.func @transform_0(%arg0: i32) -> (i32, i32) {
    %c0_i32 = arith.constant 0 : i32
    %c0_i32_0 = arith.constant 0 : i32
    return %arg0, %c0_i32 : i32, i32
  }
  func.func @transform_1(%arg0: i32) -> (i32, i32) {
    %c0_i32 = arith.constant 0 : i32
    %c0_i32_0 = arith.constant 0 : i32
    %c0_i32_1 = arith.constant 0 : i32
    return %c0_i32, %c0_i32_0 : i32, i32
  }
  func.func @transform_2(%arg0: i32) -> (i32, i32) {
    %c0_i32 = arith.constant 0 : i32
    %c0_i32_0 = arith.constant 0 : i32
    %c0_i32_1 = arith.constant 0 : i32
    return %c0_i32, %c0_i32_0 : i32, i32
  }
  func.func @transform_3(%arg0: i32) -> (i32, i32) {
    %c0_i32 = arith.constant 0 : i32
    %c0_i32_0 = arith.constant 0 : i32
    %c0_i32_1 = arith.constant 0 : i32
    return %c0_i32, %c0_i32_0 : i32, i32
  }
  func.func @transform_4(%arg0: i32) -> (i32, i32) {
    %c0_i32 = arith.constant 0 : i32
    %c0_i32_0 = arith.constant 0 : i32
    return %arg0, %c0_i32 : i32, i32
  }
}

</mosaic_0001>

<bundles_post_ra>
// kernel: tpu_custom_call.1
= control target key start
LH: loop header
LB: loop body
LE: loop exit
PB: predicated region body
PF: predicated region fallthrough
CT: control target
= control target key end

     0   :  { %9 = vsyncpa [#allocation3], 0  ;;  %v798_v2 = vmov 0.0|0.0   ;;  %vm799_vm0 = vmmov 0   ;;  %v800_v6 = vmov 0.0   ;;  %vm106_vm1 = vcmask 130048   ;;  %s1008_s0 = inlined_call_operand.vmem [shape: f32[4,128], index: 0, kind: input, shape index: {}]   ;;  %s1009_s1 = inlined_call_operand.vmem [shape: f32[1,128], index: 1, kind: input, shape index: {}]   ;;  %s1010_s2 = inlined_call_operand.vmem [shape: f32[1,128], index: 2, kind: input, shape index: {}]   ;;  %s1011_s3 = inlined_call_operand.vmem [shape: f32[128,16], index: 3, kind: input, shape index: {}]   ;;  %s1012_s4 = inlined_call_operand.hbm [shape: f32[4,128], index: 4, kind: output, shape index: {}]  }
   0x1   :  { %v19_v0 = vld [vmem:[%s1011_s3] sm:$0xff]  ;;  %v20_v1 = vld [vmem:[%s1011_s3 + $0x8] sm:$0xff]  ;;  %654 = vmatprep.subr.bf16.mxu1 %v798_v2  ;;  %v21_v4 = vld [vmem:[%s1011_s3 + $0x10] sm:$0xff]  ;;  %710 = vmatprep.subr.bf16.mxu0 %v798_v2 }
   0x2   :  { %v836_v3 = vpack.c.bf16 %v20_v1, %v19_v0  ;;  %v22_v5 = vld [vmem:[%s1011_s3 + $0x18] sm:$0xff]  ;;  %546 = vmatprep.mubr.msk.f32.mxu1 %vm799_vm0, %v800_v6  ;;  %616 = vmatprep.mubr.msk.f32.mxu0 %vm799_vm0, %v800_v6  ;;  %v23_v8 = vld [vmem:[%s1011_s3 + $0x20] sm:$0xff]  ;;  %v24_v9 = vld [vmem:[%s1011_s3 + $0x28] sm:$0xff] }
   0x3   :  { %v850_v7 = vpack.c.bf16 %v22_v5, %v21_v4  ;;  %v862_v10 = vpack.c.bf16 %v24_v9, %v23_v8  ;;  %v25_v11 = vld [vmem:[%s1011_s3 + $0x30] sm:$0xff]  ;;  %v26_v12 = vld [vmem:[%s1011_s3 + $0x38] sm:$0xff]  ;;  %v27_v14 = vld [vmem:[%s1011_s3 + $0x40] sm:$0xff] }
   0x4   :  { %656 = vmatpush3.bf16.msra.mxu1 %v836_v3  ;;  %712 = vmatpush3.bf16.msra.mxu0 %v836_v3  ;;  %v874_v13 = vpack.c.bf16 %v26_v12, %v25_v11  ;;  %v28_v15 = vld [vmem:[%s1011_s3 + $0x48] sm:$0xff]  ;;  %v29_v17 = vld [vmem:[%s1011_s3 + $0x50] sm:$0xff]  ;;  %v30_v18 = vld [vmem:[%s1011_s3 + $0x58] sm:$0xff] }
   0x5   :  { %657 = vmatprep.subr.bf16.mxu1 %v798_v2  ;;  %713 = vmatprep.subr.bf16.mxu0 %v798_v2  ;;  %v886_v16 = vpack.c.bf16 %v28_v15, %v27_v14  ;;  %v670_v19 = vpack.c.bf16 %v30_v18, %v29_v17  ;;  %v31_v20 = vld [vmem:[%s1011_s3 + $0x60] sm:$0xff]  ;;  %v32_v21 = vld [vmem:[%s1011_s3 + $0x68] sm:$0xff]  ;;  %v33_v23 = vld [vmem:[%s1011_s3 + $0x70] sm:$0xff] }
   0x6   :  { %v673_v22 = vpack.c.bf16 %v32_v21, %v31_v20  ;;  %v34_v24 = vld [vmem:[%s1011_s3 + $0x78] sm:$0xff]  ;;  %v18_v26 = vld [vmem:[%s1008_s0] sm:$0xff]  ;;  %vm926_vm2 = vmpackc.low %vm106_vm1, %vm106_vm1 }
   0x7   :  { %v676_v25 = vpack.c.bf16 %v34_v24, %v33_v23  ;;  %v444_v41 = vld [vmem:[%s1009_s1] ss:$0 sm:$0xff] }
   0x8   :  { %659 = vmatpush3.bf16.msra.mxu1 %v850_v7  ;;  %715 = vmatpush3.bf16.msra.mxu0 %v850_v7  ;;  %v445_v44 = vld [vmem:[%s1010_s2] ss:$0 sm:$0xff] }
   0x9   :  { %660 = vmatprep.subr.bf16.mxu1 %v798_v2  ;;  %716 = vmatprep.subr.bf16.mxu0 %v798_v2 }
   0xc   :  { %662 = vmatpush3.bf16.msra.mxu1 %v862_v10  ;;  %718 = vmatpush3.bf16.msra.mxu0 %v862_v10 }
   0xd   :  { %663 = vmatprep.subr.bf16.mxu1 %v798_v2  ;;  %719 = vmatprep.subr.bf16.mxu0 %v798_v2 }
  0x10   :  { %665 = vmatpush3.bf16.msra.mxu1 %v874_v13  ;;  %721 = vmatpush3.bf16.msra.mxu0 %v874_v13 }
  0x11   :  { %666 = vmatprep.subr.bf16.mxu1 %v798_v2  ;;  %722 = vmatprep.subr.bf16.mxu0 %v798_v2 }
  0x14   :  { %668 = vmatpush3.bf16.msra.mxu1 %v886_v16  ;;  %724 = vmatpush3.bf16.msra.mxu0 %v886_v16 }
  0x15   :  { %669 = vmatprep.subr.bf16.mxu1 %v798_v2  ;;  %725 = vmatprep.subr.bf16.mxu0 %v798_v2 }
  0x18   :  { %671 = vmatpush3.bf16.msra.mxu1 %v670_v19  ;;  %727 = vmatpush3.bf16.msra.mxu0 %v670_v19 }
  0x19   :  { %672 = vmatprep.subr.bf16.mxu1 %v798_v2  ;;  %728 = vmatprep.subr.bf16.mxu0 %v798_v2 }
  0x1c   :  { %674 = vmatpush3.bf16.msra.mxu1 %v673_v22  ;;  %730 = vmatpush3.bf16.msra.mxu0 %v673_v22 }
  0x1d   :  { %675 = vmatprep.subr.bf16.mxu1 %v798_v2  ;;  %731 = vmatprep.subr.bf16.mxu0 %v798_v2 }
  0x20   :  { %677 = vmatpush3.bf16.msra.mxu1 %v676_v25  ;;  %733 = vmatpush3.bf16.msra.mxu0 %v676_v25 }
  0x21   :  { %678 = vmatprep.subr.bf16.mxu1 %v798_v2  ;;  %734 = vmatprep.subr.bf16.mxu0 %v798_v2 }
  0x23   :  { %547 = vmatmul.mubr.f32.vlgmr.msra.gmra.mrb[0].mxu1 %v18_v26 }
  0x24   :  { %581 = vmatprep.mubr.msk.f32.mxu1 %vm799_vm0, %v800_v6 }
  0x29   :  { %681 = vmatpush3.bf16.xpose.msk.msra.mxu1 %vm926_vm2, %v836_v3 }
  0x2a   :  { %682 = vmatprep.subr.bf16.mxu1 %v798_v2 }
  0x31   :  { %685 = vmatpush3.bf16.xpose.msk.msra.mxu1 %vm926_vm2, %v850_v7 }
  0x32   :  { %686 = vmatprep.subr.bf16.mxu1 %v798_v2 }
  0x39   :  { %689 = vmatpush3.bf16.xpose.msk.msra.mxu1 %vm926_vm2, %v862_v10 }
  0x3a   :  { %690 = vmatprep.subr.bf16.mxu1 %v798_v2 }
  0x41   :  { %693 = vmatpush3.bf16.xpose.msk.msra.mxu1 %vm926_vm2, %v874_v13 }
  0x42   :  { %694 = vmatprep.subr.bf16.mxu1 %v798_v2 }
  0x49   :  { %697 = vmatpush3.bf16.xpose.msk.msra.mxu1 %vm926_vm2, %v886_v16 }
  0x4a   :  { %698 = vmatprep.subr.bf16.mxu1 %v798_v2 }
  0x51   :  { %701 = vmatpush3.bf16.xpose.msk.msra.mxu1 %vm926_vm2, %v670_v19 }
  0x52   :  { %702 = vmatprep.subr.bf16.mxu1 %v798_v2 }
  0x59   :  { %705 = vmatpush3.bf16.xpose.msk.msra.mxu1 %vm926_vm2, %v673_v22 }
  0x5a   :  { %706 = vmatprep.subr.bf16.mxu1 %v798_v2 }
  0x61   :  { %709 = vmatpush3.bf16.xpose.msk.msra.mxu1 %vm926_vm2, %v676_v25 }
  0xf6   :  { %v101_v28 = vpop.f32.mrb[0].mxu1 }
  0xf7   :  { %v105_v29 = vmul.f32 0.125, %v101_v28  ;;  %v548_v30 = vpop.f32.mrb[1].mxu1 }
  0xf9   :  { %582 = vmatmul.mubr.msk.f32.vlgmr.msra.gmra.mrb[2].mxu1 %vm106_vm1, %v105_v29 }
 0x1cc   :  { %v224_v31 = vpop.f32.mrb[2].mxu1 }
 0x1cd   :  { %v228_v32 = vsub.f32 %v18_v26, %v224_v31  ;;  %v583_v33 = vpop.f32.mrb[3].mxu1 }
 0x1cf   :  { %v229_v34 = vmul.f32 %v228_v32, %v228_v32 }
 0x1d1   :  { %617 = vmatmul.mubr.f32.vlgmr.msra.gmra.mrb[0].mxu0 %v229_v34 }
 0x1d2   :  { %737 = vmatpush3.bf16.xpose.msk.msra.mxu0 %vm926_vm2, %v836_v3  ;;  %651 = vmatprep.mubr.msk.f32.mxu0 %vm799_vm0, %v800_v6 }
 0x1d3   :  { %738 = vmatprep.subr.bf16.mxu0 %v798_v2 }
 0x1da   :  { %741 = vmatpush3.bf16.xpose.msk.msra.mxu0 %vm926_vm2, %v850_v7 }
 0x1db   :  { %742 = vmatprep.subr.bf16.mxu0 %v798_v2 }
 0x1e2   :  { %745 = vmatpush3.bf16.xpose.msk.msra.mxu0 %vm926_vm2, %v862_v10 }
 0x1e3   :  { %746 = vmatprep.subr.bf16.mxu0 %v798_v2 }
 0x1ea   :  { %749 = vmatpush3.bf16.xpose.msk.msra.mxu0 %vm926_vm2, %v874_v13 }
 0x1eb   :  { %750 = vmatprep.subr.bf16.mxu0 %v798_v2 }
 0x1f2   :  { %753 = vmatpush3.bf16.xpose.msk.msra.mxu0 %vm926_vm2, %v886_v16 }
 0x1f3   :  { %754 = vmatprep.subr.bf16.mxu0 %v798_v2 }
 0x1fa   :  { %757 = vmatpush3.bf16.xpose.msk.msra.mxu0 %vm926_vm2, %v670_v19 }
 0x1fb   :  { %758 = vmatprep.subr.bf16.mxu0 %v798_v2 }
 0x202   :  { %761 = vmatpush3.bf16.xpose.msk.msra.mxu0 %vm926_vm2, %v673_v22 }
 0x203   :  { %762 = vmatprep.subr.bf16.mxu0 %v798_v2 }
 0x20a   :  { %765 = vmatpush3.bf16.xpose.msk.msra.mxu0 %vm926_vm2, %v676_v25 }
 0x2a4   :  { %v296_v35 = vpop.f32.mrb[0].mxu0 }
 0x2a5   :  { %v300_v36 = vmul.f32 0.125, %v296_v35  ;;  %v618_v37 = vpop.f32.mrb[1].mxu0 }
 0x2a7   :  { %v301_v38 = vadd.f32 1e-12, %v300_v36 }
 0x2a9   :  { %772 = vrsqrt.f32 %v301_v38 }
 0x2b3   :  { %v773_v39 = vpop.eup %772 }
 0x2b4   :  { %652 = vmatmul.mubr.msk.f32.vlgmr.msra.gmra.mrb[2].mxu0 %vm106_vm1, %v773_v39 }
 0x387   :  { %v372_v40 = vpop.f32.mrb[2].mxu0 }
 0x388   :  { %v378_v42 = vmul.f32 %v372_v40, %v228_v32  ;;  %v653_v43 = vpop.f32.mrb[3].mxu0 }
 0x38a   :  { %v385_v45 = vmul.f32 %v444_v41, %v378_v42 }
 0x38c   :  { %v392_v46 = vadd.f32 %v445_v44, %v385_v45 }
 0x38e   :  { %393 = vst [vmem:[#allocation2] sm:$0xff] %v392_v46 }
 0x38f   :  { %398 = vsyncadd [#allocation3], 64  ;;  %s801_s25 = smov [#allocation2]  }
 0x390   :  { %s399_s26 = sshll.u32 %s801_s25, 4  ;;  %s400_s26 = int_to_ptr.vmem [resolvable:$true] %s399_s26 }
 0x391   :  { %s774_s27 = scalar_lea.vmem %s400_s26, 64  ;;  %s778_s28 = scalar_lea.vmem %s400_s26, 128 }
 0x392   :  { %p775_p0 = scmp.ne.s32.totalorder %s400_s26, %s774_s27  ;;  %p779_p1 = scmp.lt.s32.totalorder %s400_s26, %s400_s26 }
 0x393   :  { %p780_p2 = scmp.lt.s32.totalorder %s778_s28, %s774_s27 }
 0x395   :  { %p781_p3 = por %p780_p2, %p779_p1 }
 0x397   :  { %p782_p4 = pnand %p781_p3, %p775_p0 }
 0x399   :  { %785 = shalt.err (!%p782_p4)
}
 0x39a   :  { %s786_s30 = scalar_lea.hbm %s1012_s4, 64 }
 0x39b   :  { %p787_p5 = scmp.ne.s32.totalorder %s1012_s4, %s786_s30  ;;  %p790_p6 = scmp.lt.u32.totalorder %s786_s30, %s1012_s4 }
 0x39d   :  { %p792_p7 = pnand %p790_p6, %p787_p5 }
 0x39f   :  { %795 = shalt.err (!%p792_p7)
}
 0x3a0   :  { %s802_s8 = smov 64   ;;  %s803_s9 = smov 4  }
 0x3a1   :  { %405 = dma.vmem_to_hbm [thread:$0]  %s400_s26, 64, %s1012_s4, [#allocation3], %s802_s8, %s802_s8, %s803_s9  }
 0x3a2   :  { %796 = dma.done.wait [#allocation3], 128  }
 0x3a3   :  { %797 = vsyncadd [#allocation3], 4294967168 }
 0x3a4   :  { %409 = vsyncpa [#allocation3], 1 }

// kernel: tpu_custom_call.1
= control target key start
LH: loop header
LB: loop body
LE: loop exit
PB: predicated region body
PF: predicated region fallthrough
CT: control target
= control target key end

     0   :  { %9 = vsyncpa [#allocation3], 0  ;;  %v798_v2 = vmov 0.0|0.0   ;;  %vm799_vm0 = vmmov 0   ;;  %v800_v6 = vmov 0.0   ;;  %vm106_vm1 = vcmask 130048   ;;  %s1008_s0 = inlined_call_operand.vmem [shape: f32[4,128], index: 0, kind: input, shape index: {}]   ;;  %s1009_s1 = inlined_call_operand.vmem [shape: f32[1,128], index: 1, kind: input, shape index: {}]   ;;  %s1010_s2 = inlined_call_operand.vmem [shape: f32[1,128], index: 2, kind: input, shape index: {}]   ;;  %s1011_s3 = inlined_call_operand.vmem [shape: f32[128,16], index: 3, kind: input, shape index: {}]   ;;  %s1012_s4 = inlined_call_operand.hbm [shape: f32[4,128], index: 4, kind: output, shape index: {}]  }
   0x1   :  { %v19_v0 = vld [vmem:[%s1011_s3] sm:$0xff]  ;;  %v20_v1 = vld [vmem:[%s1011_s3 + $0x8] sm:$0xff]  ;;  %654 = vmatprep.subr.bf16.mxu1 %v798_v2  ;;  %v21_v4 = vld [vmem:[%s1011_s3 + $0x10] sm:$0xff]  ;;  %710 = vmatprep.subr.bf16.mxu0 %v798_v2 }
   0x2   :  { %v836_v3 = vpack.c.bf16 %v20_v1, %v19_v0  ;;  %v22_v5 = vld [vmem:[%s1011_s3 + $0x18] sm:$0xff]  ;;  %546 = vmatprep.mubr.msk.f32.mxu1 %vm799_vm0, %v800_v6  ;;  %616 = vmatprep.mubr.msk.f32.mxu0 %vm799_vm0, %v800_v6  ;;  %v23_v8 = vld [vmem:[%s1011_s3 + $0x20] sm:$0xff]  ;;  %v24_v9 = vld [vmem:[%s1011_s3 + $0x28] sm:$0xff] }
   0x3   :  { %v850_v7 = vpack.c.bf16 %v22_v5, %v21_v4  ;;  %v862_v10 = vpack.c.bf16 %v24_v9, %v23_v8  ;;  %v25_v11 = vld [vmem:[%s1011_s3 + $0x30] sm:$0xff]  ;;  %v26_v12 = vld [vmem:[%s1011_s3 + $0x38] sm:$0xff]  ;;  %v27_v14 = vld [vmem:[%s1011_s3 + $0x40] sm:$0xff] }
   0x4   :  { %656 = vmatpush3.bf16.msra.mxu1 %v836_v3  ;;  %712 = vmatpush3.bf16.msra.mxu0 %v836_v3  ;;  %v874_v13 = vpack.c.bf16 %v26_v12, %v25_v11  ;;  %v28_v15 = vld [vmem:[%s1011_s3 + $0x48] sm:$0xff]  ;;  %v29_v17 = vld [vmem:[%s1011_s3 + $0x50] sm:$0xff]  ;;  %v30_v18 = vld [vmem:[%s1011_s3 + $0x58] sm:$0xff] }
   0x5   :  { %657 = vmatprep.subr.bf16.mxu1 %v798_v2  ;;  %713 = vmatprep.subr.bf16.mxu0 %v798_v2  ;;  %v886_v16 = vpack.c.bf16 %v28_v15, %v27_v14  ;;  %v670_v19 = vpack.c.bf16 %v30_v18, %v29_v17  ;;  %v31_v20 = vld [vmem:[%s1011_s3 + $0x60] sm:$0xff]  ;;  %v32_v21 = vld [vmem:[%s1011_s3 + $0x68] sm:$0xff]  ;;  %v33_v23 = vld [vmem:[%s1011_s3 + $0x70] sm:$0xff] }
   0x6   :  { %v673_v22 = vpack.c.bf16 %v32_v21, %v31_v20  ;;  %v34_v24 = vld [vmem:[%s1011_s3 + $0x78] sm:$0xff]  ;;  %v18_v26 = vld [vmem:[%s1008_s0] sm:$0xff]  ;;  %vm926_vm2 = vmpackc.low %vm106_vm1, %vm106_vm1 }
   0x7   :  { %v676_v25 = vpack.c.bf16 %v34_v24, %v33_v23  ;;  %v444_v41 = vld [vmem:[%s1009_s1] ss:$0 sm:$0xff] }
   0x8   :  { %659 = vmatpush3.bf16.msra.mxu1 %v850_v7  ;;  %715 = vmatpush3.bf16.msra.mxu0 %v850_v7  ;;  %v445_v44 = vld [vmem:[%s1010_s2] ss:$0 sm:$0xff] }
   0x9   :  { %660 = vmatprep.subr.bf16.mxu1 %v798_v2  ;;  %716 = vmatprep.subr.bf16.mxu0 %v798_v2 }
   0xc   :  { %662 = vmatpush3.bf16.msra.mxu1 %v862_v10  ;;  %718 = vmatpush3.bf16.msra.mxu0 %v862_v10 }
   0xd   :  { %663 = vmatprep.subr.bf16.mxu1 %v798_v2  ;;  %719 = vmatprep.subr.bf16.mxu0 %v798_v2 }
  0x10   :  { %665 = vmatpush3.bf16.msra.mxu1 %v874_v13  ;;  %721 = vmatpush3.bf16.msra.mxu0 %v874_v13 }
  0x11   :  { %666 = vmatprep.subr.bf16.mxu1 %v798_v2  ;;  %722 = vmatprep.subr.bf16.mxu0 %v798_v2 }
  0x14   :  { %668 = vmatpush3.bf16.msra.mxu1 %v886_v16  ;;  %724 = vmatpush3.bf16.msra.mxu0 %v886_v16 }
  0x15   :  { %669 = vmatprep.subr.bf16.mxu1 %v798_v2  ;;  %725 = vmatprep.subr.bf16.mxu0 %v798_v2 }
  0x18   :  { %671 = vmatpush3.bf16.msra.mxu1 %v670_v19  ;;  %727 = vmatpush3.bf16.msra.mxu0 %v670_v19 }
  0x19   :  { %672 = vmatprep.subr.bf16.mxu1 %v798_v2  ;;  %728 = vmatprep.subr.bf16.mxu0 %v798_v2 }
  0x1c   :  { %674 = vmatpush3.bf16.msra.mxu1 %v673_v22  ;;  %730 = vmatpush3.bf16.msra.mxu0 %v673_v22 }
  0x1d   :  { %675 = vmatprep.subr.bf16.mxu1 %v798_v2  ;;  %731 = vmatprep.subr.bf16.mxu0 %v798_v2 }
  0x20   :  { %677 = vmatpush3.bf16.msra.mxu1 %v676_v25  ;;  %733 = vmatpush3.bf16.msra.mxu0 %v676_v25 }
  0x21   :  { %678 = vmatprep.subr.bf16.mxu1 %v798_v2  ;;  %734 = vmatprep.subr.bf16.mxu0 %v798_v2 }
  0x23   :  { %547 = vmatmul.mubr.f32.vlgmr.msra.gmra.mrb[0].mxu1 %v18_v26 }
  0x24   :  { %581 = vmatprep.mubr.msk.f32.mxu1 %vm799_vm0, %v800_v6 }
  0x29   :  { %681 = vmatpush3.bf16.xpose.msk.msra.mxu1 %vm926_vm2, %v836_v3 }
  0x2a   :  { %682 = vmatprep.subr.bf16.mxu1 %v798_v2 }
  0x31   :  { %685 = vmatpush3.bf16.xpose.msk.msra.mxu1 %vm926_vm2, %v850_v7 }
  0x32   :  { %686 = vmatprep.subr.bf16.mxu1 %v798_v2 }
  0x39   :  { %689 = vmatpush3.bf16.xpose.msk.msra.mxu1 %vm926_vm2, %v862_v10 }
  0x3a   :  { %690 = vmatprep.subr.bf16.mxu1 %v798_v2 }
  0x41   :  { %693 = vmatpush3.bf16.xpose.msk.msra.mxu1 %vm926_vm2, %v874_v13 }
  0x42   :  { %694 = vmatprep.subr.bf16.mxu1 %v798_v2 }
  0x49   :  { %697 = vmatpush3.bf16.xpose.msk.msra.mxu1 %vm926_vm2, %v886_v16 }
  0x4a   :  { %698 = vmatprep.subr.bf16.mxu1 %v798_v2 }
  0x51   :  { %701 = vmatpush3.bf16.xpose.msk.msra.mxu1 %vm926_vm2, %v670_v19 }
  0x52   :  { %702 = vmatprep.subr.bf16.mxu1 %v798_v2 }
  0x59   :  { %705 = vmatpush3.bf16.xpose.msk.msra.mxu1 %vm926_vm2, %v673_v22 }
  0x5a   :  { %706 = vmatprep.subr.bf16.mxu1 %v798_v2 }
  0x61   :  { %709 = vmatpush3.bf16.xpose.msk.msra.mxu1 %vm926_vm2, %v676_v25 }
  0xf6   :  { %v101_v28 = vpop.f32.mrb[0].mxu1 }
  0xf7   :  { %v105_v29 = vmul.f32 0.125, %v101_v28  ;;  %v548_v30 = vpop.f32.mrb[1].mxu1 }
  0xf9   :  { %582 = vmatmul.mubr.msk.f32.vlgmr.msra.gmra.mrb[2].mxu1 %vm106_vm1, %v105_v29 }
 0x1cc   :  { %v224_v31 = vpop.f32.mrb[2].mxu1 }
 0x1cd   :  { %v228_v32 = vsub.f32 %v18_v26, %v224_v31  ;;  %v583_v33 = vpop.f32.mrb[3].mxu1 }
 0x1cf   :  { %v229_v34 = vmul.f32 %v228_v32, %v228_v32 }
 0x1d1   :  { %617 = vmatmul.mubr.f32.vlgmr.msra.gmra.mrb[0].mxu0 %v229_v34 }
 0x1d2   :  { %737 = vmatpush3.bf16.xpose.msk.msra.mxu0 %vm926_vm2, %v836_v3  ;;  %651 = vmatprep.mubr.msk.f32.mxu0 %vm799_vm0, %v800_v6 }
 0x1d3   :  { %738 = vmatprep.subr.bf16.mxu0 %v798_v2 }
 0x1da   :  { %741 = vmatpush3.bf16.xpose.msk.msra.mxu0 %vm926_vm2, %v850_v7 }
 0x1db   :  { %742 = vmatprep.subr.bf16.mxu0 %v798_v2 }
 0x1e2   :  { %745 = vmatpush3.bf16.xpose.msk.msra.mxu0 %vm926_vm2, %v862_v10 }
 0x1e3   :  { %746 = vmatprep.subr.bf16.mxu0 %v798_v2 }
 0x1ea   :  { %749 = vmatpush3.bf16.xpose.msk.msra.mxu0 %vm926_vm2, %v874_v13 }
 0x1eb   :  { %750 = vmatprep.subr.bf16.mxu0 %v798_v2 }
 0x1f2   :  { %753 = vmatpush3.bf16.xpose.msk.msra.mxu0 %vm926_vm2, %v886_v16 }
 0x1f3   :  { %754 = vmatprep.subr.bf16.mxu0 %v798_v2 }
 0x1fa   :  { %757 = vmatpush3.bf16.xpose.msk.msra.mxu0 %vm926_vm2, %v670_v19 }
 0x1fb   :  { %758 = vmatprep.subr.bf16.mxu0 %v798_v2 }
 0x202   :  { %761 = vmatpush3.bf16.xpose.msk.msra.mxu0 %vm926_vm2, %v673_v22 }
 0x203   :  { %762 = vmatprep.subr.bf16.mxu0 %v798_v2 }
 0x20a   :  { %765 = vmatpush3.bf16.xpose.msk.msra.mxu0 %vm926_vm2, %v676_v25 }
 0x2a4   :  { %v296_v35 = vpop.f32.mrb[0].mxu0 }
 0x2a5   :  { %v300_v36 = vmul.f32 0.125, %v296_v35  ;;  %v618_v37 = vpop.f32.mrb[1].mxu0 }
 0x2a7   :  { %v301_v38 = vadd.f32 1e-12, %v300_v36 }
 0x2a9   :  { %772 = vrsqrt.f32 %v301_v38 }
 0x2b3   :  { %v773_v39 = vpop.eup %772 }
 0x2b4   :  { %652 = vmatmul.mubr.msk.f32.vlgmr.msra.gmra.mrb[2].mxu0 %vm106_vm1, %v773_v39 }
 0x387   :  { %v372_v40 = vpop.f32.mrb[2].mxu0 }
 0x388   :  { %v378_v42 = vmul.f32 %v372_v40, %v228_v32  ;;  %v653_v43 = vpop.f32.mrb[3].mxu0 }
 0x38a   :  { %v385_v45 = vmul.f32 %v444_v41, %v378_v42 }
 0x38c   :  { %v392_v46 = vadd.f32 %v445_v44, %v385_v45 }
 0x38e   :  { %393 = vst [vmem:[#allocation2] sm:$0xff] %v392_v46 }
 0x38f   :  { %398 = vsyncadd [#allocation3], 64  ;;  %s801_s25 = smov [#allocation2]  }
 0x390   :  { %s399_s26 = sshll.u32 %s801_s25, 4  ;;  %s400_s26 = int_to_ptr.vmem [resolvable:$true] %s399_s26 }
 0x391   :  { %s774_s27 = scalar_lea.vmem %s400_s26, 64  ;;  %s778_s28 = scalar_lea.vmem %s400_s26, 128 }
 0x392   :  { %p775_p0 = scmp.ne.s32.totalorder %s400_s26, %s774_s27  ;;  %p779_p1 = scmp.lt.s32.totalorder %s400_s26, %s400_s26 }
 0x393   :  { %p780_p2 = scmp.lt.s32.totalorder %s778_s28, %s774_s27 }
 0x395   :  { %p781_p3 = por %p780_p2, %p779_p1 }
 0x397   :  { %p782_p4 = pnand %p781_p3, %p775_p0 }
 0x399   :  { %785 = shalt.err (!%p782_p4)
}
 0x39a   :  { %s786_s30 = scalar_lea.hbm %s1012_s4, 64 }
 0x39b   :  { %p787_p5 = scmp.ne.s32.totalorder %s1012_s4, %s786_s30  ;;  %p790_p6 = scmp.lt.u32.totalorder %s786_s30, %s1012_s4 }
 0x39d   :  { %p792_p7 = pnand %p790_p6, %p787_p5 }
 0x39f   :  { %795 = shalt.err (!%p792_p7)
}
 0x3a0   :  { %s802_s8 = smov 64   ;;  %s803_s9 = smov 4  }
 0x3a1   :  { %405 = dma.vmem_to_hbm [thread:$0]  %s400_s26, 64, %s1012_s4, [#allocation3], %s802_s8, %s802_s8, %s803_s9  }
 0x3a2   :  { %796 = dma.done.wait [#allocation3], 128  }
 0x3a3   :  { %797 = vsyncadd [#allocation3], 4294967168 }
 0x3a4   :  { %409 = vsyncpa [#allocation3], 1 }

</bundles_post_ra>
